<compile_context>
chip_gen: v6e
topology: v6e:2x2x1
jax: 0.10.0
libtpu: 0.0.40
codegen_flags: <defaults>
</compile_context>

<pallas_src>
import functools

import jax
import jax.numpy as jnp
from jax.experimental import pallas as pl
from jax.experimental.pallas import tpu as pltpu


# --------------------------------------------------------------------------- precompute
def _precompute_kernel(dec_in_ref, pmask1_ref, pmask2_ref,
                       pre_w1_ref, pre_w2_ref, attn_wih_p_ref, attn_b_ref,
                       memory_ref, mem_w_ref,
                       attn_x_ref, proc_mem_ref):
  """Step-independent (teacher-forced) work, batched over all steps: MXU shaped."""
  dot = functools.partial(jnp.dot, preferred_element_type=jnp.float32)
  # Prenet over all (T_steps * B) rows at once.
  h = jnp.maximum(dot(dec_in_ref[...], pre_w1_ref[...]), 0.0) * pmask1_ref[...]
  h = jnp.maximum(dot(h, pre_w2_ref[...]), 0.0) * pmask2_ref[...]
  # Input-to-hidden half of the attention LSTM (+ combined b_ih+b_hh), hoisted.
  attn_x_ref[...] = dot(h, attn_wih_p_ref[...]) + attn_b_ref[...]
  # processed_memory = memory_layer(memory) over (B * T_in) rows.
  proc_mem_ref[...] = dot(memory_ref[...], mem_w_ref[...])


# --------------------------------------------------------------------------- recurrent kernel
def _decoder_kernel(
    # per-(batch_block, time_chunk) inputs
    attn_x_ref, admask_ref, ddmask_ref,
    # per-batch_block inputs
    memory_ref, proc_mem_ref, mask_add_ref,
    # weights (full)
    attn_wih_ctx_ref, attn_whh_ref,
    query_w_ref, v_col_ref, loc_conv_ref, loc_dense_ref,
    dec_wih_h_ref, dec_wih_ctx_ref, dec_whh_ref, dec_b_ref,
    pg_w_h_ref, pg_w_ctx_ref, pg_b_ref,
    # outputs
    melgate_ref, align_ref,
    # scratch (recurrent state; persists across time chunks)
    attn_h, attn_c, dec_h, dec_c, attn_ctx, aw_state,
    *, dims, t_chunk):
  Bb, T_in, E, A_rnn, D_rnn, A_dim, F_loc, K = dims
  pad = (K - 1) // 2
  dot = functools.partial(jnp.dot, preferred_element_type=jnp.float32)

  # ---- initialize_decoder_states: first time chunk of each batch block ----
  @pl.when(pl.program_id(1) == 0)
  def _init():
    attn_h[...] = jnp.zeros_like(attn_h)
    attn_c[...] = jnp.zeros_like(attn_c)
    dec_h[...] = jnp.zeros_like(dec_h)
    dec_c[...] = jnp.zeros_like(dec_c)
    attn_ctx[...] = jnp.zeros_like(attn_ctx)
    # padded layout: pad columns are zeroed here and NEVER written afterwards
    # (only the [pad:pad+T_in] data region is updated each step).
    aw_state[...] = jnp.zeros_like(aw_state)

  # ---- chunk-invariant loads / broadcasts (hoisted; JAX does not CSE these) ----
  memory = memory_ref[...]                     # (Bb, T_in, E)
  proc_mem = proc_mem_ref[...]                 # (Bb, T_in, A_dim)
  mask_add = mask_add_ref[...]                 # (Bb, T_in)
  wih_ctx = attn_wih_ctx_ref[...]              # (E, 4*A_rnn)
  whh = attn_whh_ref[...]                      # (A_rnn, 4*A_rnn)
  query_w = query_w_ref[...]                   # (A_rnn, A_dim)
  v_col = v_col_ref[...]                       # (A_dim, 1)
  loc_dense = loc_dense_ref[...]               # (F_loc, A_dim)
  loc_w_all = loc_conv_ref[...]                # (K, 2, F_loc)
  loc_taps = [[loc_w_all[k, c].reshape(1, 1, F_loc) for c in range(2)]
              for k in range(K)]
  dwih_h = dec_wih_h_ref[...]                  # (A_rnn, 4*D_rnn)
  dwih_ctx = dec_wih_ctx_ref[...]              # (E, 4*D_rnn)
  dwhh = dec_whh_ref[...]                      # (D_rnn, 4*D_rnn)
  dec_b = dec_b_ref[...]                       # (1, 4*D_rnn)
  pg_w_h = pg_w_h_ref[...]                     # (D_rnn, M+1)
  pg_w_ctx = pg_w_ctx_ref[...]                 # (E, M+1)
  pg_b = pg_b_ref[...]                         # (1, M+1)

  # ---- unrolled decode loop over this time chunk ----
  for ts in range(t_chunk):
    # attention_rnn (LSTMCell); the x @ W_ih[:P] + bias part was precomputed.
    gates = attn_x_ref[ts] + dot(attn_ctx[...], wih_ctx) + dot(attn_h[...], whh)
    i_g = jax.nn.sigmoid(gates[:, 0 * A_rnn:1 * A_rnn])
    f_g = jax.nn.sigmoid(gates[:, 1 * A_rnn:2 * A_rnn])
    g_g = jnp.tanh(gates[:, 2 * A_rnn:3 * A_rnn])
    o_g = jax.nn.sigmoid(gates[:, 3 * A_rnn:4 * A_rnn])
    c_new = f_g * attn_c[...] + i_g * g_g
    ah = o_g * jnp.tanh(c_new) * admask_ref[ts]      # attention dropout (pre-scaled)
    attn_c[...] = c_new
    attn_h[...] = ah

    # location-sensitive attention.  aw_state holds [prev, cumulative] weights
    # in the conv-padded layout; VPU accumulation over the small F_loc dim,
    # then the F_loc -> A_dim projection on the MXU.
    aw_pad = aw_state[...]                           # (2, Bb, T_in + K - 1)
    proc_loc = None
    for k in range(K):
      for c in range(2):
        term = aw_pad[c, :, k:k + T_in][:, :, None] * loc_taps[k][c]
        proc_loc = term if proc_loc is None else proc_loc + term
    proc_att = dot(proc_loc, loc_dense)              # (Bb, T_in, A_dim)  MXU
    proc_query = dot(ah, query_w)                    # (Bb, A_dim)
    tanh_in = jnp.tanh(proc_query[:, None, :] + proc_att + proc_mem)
    energies = dot(tanh_in, v_col)[:, :, 0] + mask_add   # (Bb, T_in)     MXU
    e_max = jnp.max(energies, axis=-1, keepdims=True)
    e_exp = jnp.exp(energies - e_max)
    denom = jnp.sum(e_exp, axis=-1, keepdims=True)
    w_new = e_exp * pl.reciprocal(denom, approx=True)    # softmax over T_in
    ctx = jnp.einsum('bqt,bte->bqe', w_new[:, None, :], memory,
                     preferred_element_type=jnp.float32)[:, 0, :]   # (Bb, E) MXU
    aw_state[0, :, pad:pad + T_in] = w_new
    aw_state[1, :, pad:pad + T_in] = aw_pad[1, :, pad:pad + T_in] + w_new
    attn_ctx[...] = ctx

    # decoder_rnn (LSTMCell); input = [attention_hidden, attention_context]
    d_gates = (dot(ah, dwih_h) + dot(ctx, dwih_ctx)
               + dot(dec_h[...], dwhh) + dec_b)
    di_g = jax.nn.sigmoid(d_gates[:, 0 * D_rnn:1 * D_rnn])
    df_g = jax.nn.sigmoid(d_gates[:, 1 * D_rnn:2 * D_rnn])
    dg_g = jnp.tanh(d_gates[:, 2 * D_rnn:3 * D_rnn])
    do_g = jax.nn.sigmoid(d_gates[:, 3 * D_rnn:4 * D_rnn])
    dc_new = df_g * dec_c[...] + di_g * dg_g
    dh = do_g * jnp.tanh(dc_new) * ddmask_ref[ts]    # decoder dropout (pre-scaled)
    dec_c[...] = dc_new
    dec_h[...] = dh

    # fused linear_projection + gate_layer on [decoder_hidden, attention_context]
    melgate_ref[ts] = dot(dh, pg_w_h) + dot(ctx, pg_w_ctx) + pg_b
    align_ref[ts] = w_new


# --------------------------------------------------------------------------- wrapper
def decoder_forward(cfg, weights, memory, decoder_inputs, memory_lengths,
                    dropout_key, *, t_chunk=4, batch_block=None):
  B, T_in, E = memory.shape
  n_mel = cfg["n_mel_channels"]
  frames = cfg["n_frames_per_step"]
  M = n_mel * frames
  P = cfg["prenet_dim"]
  A_rnn = cfg["attention_rnn_dim"]
  D_rnn = cfg["decoder_rnn_dim"]
  A_dim = cfg["attention_dim"]
  F_loc = cfg["attention_location_n_filters"]
  K = cfg["attention_location_kernel_size"]
  T_out = decoder_inputs.shape[2]
  T_steps = T_out // frames

  Bb = B if batch_block is None else batch_block
  assert T_steps % t_chunk == 0, "t_chunk must divide the number of decoder steps"
  assert B % Bb == 0, "batch_block must divide batch"
  # batch is the second-minor dim of the per-step blocks -> (8,128) tiling rule.
  assert Bb == B or Bb % 8 == 0, "batch_block must be B or a multiple of 8"

  # --- parse_decoder_inputs + go frame (glue) ---
  di = jnp.transpose(decoder_inputs, (0, 2, 1)).reshape(B, T_steps, M)
  di = jnp.transpose(di, (1, 0, 2))                               # (T_steps, B, M)
  go = jnp.zeros((1, B, M), jnp.float32)
  dec_in = jnp.concatenate([go, di], axis=0)[:T_steps]            # steps actually consumed

  # --- dropout keep-masks (deterministic, pre-scaled by 1/(1-p)) ---
  k1, k2, k3, k4 = jax.random.split(dropout_key, 4)
  pmask1 = jax.random.bernoulli(k1, 0.5, (T_steps, B, P)).astype(jnp.float32) * 2.0
  pmask2 = jax.random.bernoulli(k2, 0.5, (T_steps, B, P)).astype(jnp.float32) * 2.0
  ka = 1.0 - cfg["p_attention_dropout"]
  kd = 1.0 - cfg["p_decoder_dropout"]
  admask = jax.random.bernoulli(k3, ka, (T_steps, B, A_rnn)).astype(jnp.float32) / ka
  ddmask = jax.random.bernoulli(k4, kd, (T_steps, B, D_rnn)).astype(jnp.float32) / kd

  # --- attention mask: ~get_mask_from_lengths -> additive -1e30 at padded cols ---
  ids = jnp.arange(T_in)[None, :]
  valid = ids < memory_lengths[:, None]
  mask_add = jnp.where(valid, 0.0, -1e30).astype(jnp.float32)

  w = weights
  memory_f32 = memory.astype(jnp.float32)

  # ---- precompute kernel: prenet + attention-LSTM input proj + processed_memory ----
  attn_x_flat, proc_mem_flat = pl.pallas_call(
      _precompute_kernel,
      out_shape=(jax.ShapeDtypeStruct((T_steps * B, 4 * A_rnn), jnp.float32),
                 jax.ShapeDtypeStruct((B * T_in, A_dim), jnp.float32)),
  )(dec_in.reshape(T_steps * B, M),
    pmask1.reshape(T_steps * B, P),
    pmask2.reshape(T_steps * B, P),
    w["pre_w1"], w["pre_w2"], w["attn_wih"][:P], w["attn_b"],
    memory_f32.reshape(B * T_in, E), w["memory_w"])
  attn_x = attn_x_flat.reshape(T_steps, B, 4 * A_rnn)
  proc_mem = proc_mem_flat.reshape(B, T_in, A_dim)

  # ---- split / fuse weights for the recurrent kernel (XLA glue, done once) ----
  attn_wih_ctx = w["attn_wih"][P:]                                # (E, 4*A_rnn)
  dec_wih_h = w["dec_wih"][:A_rnn]                                # (A_rnn, 4*D_rnn)
  dec_wih_ctx = w["dec_wih"][A_rnn:]                              # (E, 4*D_rnn)
  pg_w = jnp.concatenate([w["proj_w"], w["gate_w"]], axis=1)      # (D_rnn+E, M+1)
  pg_w_h, pg_w_ctx = pg_w[:D_rnn], pg_w[D_rnn:]
  pg_b = jnp.concatenate([w["proj_b"], w["gate_b"]], axis=1)      # (1, M+1)
  v_col = w["v_w"].T                                              # (A_dim, 1)

  weight_inputs = [attn_wih_ctx, w["attn_whh"], w["query_w"], v_col,
                   w["loc_conv"], w["loc_dense"],
                   dec_wih_h, dec_wih_ctx, w["dec_whh"], w["dec_b"],
                   pg_w_h, pg_w_ctx, pg_b]

  def per_step_spec(feat):
    return pl.BlockSpec((t_chunk, Bb, feat), lambda b, c: (c, b, 0))

  def per_batch3_spec(d1, d2):
    return pl.BlockSpec((Bb, d1, d2), lambda b, c: (b, 0, 0))

  def per_batch2_spec(d1):
    return pl.BlockSpec((Bb, d1), lambda b, c: (b, 0))

  def full_spec(arr):
    nd = arr.ndim
    return pl.BlockSpec(arr.shape, lambda b, c, nd=nd: (0,) * nd)

  in_specs = ([per_step_spec(4 * A_rnn), per_step_spec(A_rnn), per_step_spec(D_rnn),
               per_batch3_spec(T_in, E), per_batch3_spec(T_in, A_dim),
               per_batch2_spec(T_in)]
              + [full_spec(a) for a in weight_inputs])

  out_shape = (
      jax.ShapeDtypeStruct((T_steps, B, M + 1), jnp.float32),   # [mel | gate] per step
      jax.ShapeDtypeStruct((T_steps, B, T_in), jnp.float32),    # alignments per step
  )
  out_specs = (
      pl.BlockSpec((t_chunk, Bb, M + 1), lambda b, c: (c, b, 0)),
      pl.BlockSpec((t_chunk, Bb, T_in), lambda b, c: (c, b, 0)),
  )

  scratch_shapes = [
      pltpu.VMEM((Bb, A_rnn), jnp.float32),            # attention_hidden
      pltpu.VMEM((Bb, A_rnn), jnp.float32),            # attention_cell
      pltpu.VMEM((Bb, D_rnn), jnp.float32),            # decoder_hidden
      pltpu.VMEM((Bb, D_rnn), jnp.float32),            # decoder_cell
      pltpu.VMEM((Bb, E), jnp.float32),                # attention_context
      pltpu.VMEM((2, Bb, T_in + K - 1), jnp.float32),  # [prev, cum] attn weights (padded)
  ]

  grid_spec = pltpu.PrefetchScalarGridSpec(
      num_scalar_prefetch=0,
      grid=(B // Bb, T_steps // t_chunk),
      in_specs=in_specs,
      out_specs=out_specs,
      scratch_shapes=scratch_shapes,
  )

  kernel = functools.partial(
      _decoder_kernel,
      dims=(Bb, T_in, E, A_rnn, D_rnn, A_dim, F_loc, K),
      t_chunk=t_chunk)

  melgate_seq, align_seq = pl.pallas_call(
      kernel,
      out_shape=out_shape,
      grid_spec=grid_spec,
      compiler_params=pltpu.CompilerParams(
          dimension_semantics=("parallel", "arbitrary")),  # batch || ; time recurrent
  )(attn_x, admask, ddmask, memory_f32, proc_mem, mask_add, *weight_inputs)

  # --- parse_decoder_outputs (glue) ---
  mel_seq = melgate_seq[:, :, :M]                                      # (T_steps, B, M)
  gate_seq = melgate_seq[:, :, M]                                      # (T_steps, B)
  alignments = jnp.transpose(align_seq, (1, 0, 2))                     # (B, T_steps, T_in)
  gate_outputs = jnp.transpose(gate_seq, (1, 0))                       # (B, T_steps)
  mel = jnp.transpose(mel_seq, (1, 0, 2)).reshape(B, T_steps * frames, n_mel)
  mel = jnp.transpose(mel, (0, 2, 1))                                  # (B, n_mel, T_out)
  return mel, gate_outputs, alignments, (dec_in, pmask1, pmask2, admask, ddmask, mask_add)


# --------------------------------------------------------------------------- pure-JAX reference
def decoder_reference(cfg, w, memory, dec_in, mask_add, pmask1, pmask2, admask, ddmask):
  B, T_in, E = memory.shape
  n_mel = cfg["n_mel_channels"]; frames = cfg["n_frames_per_step"]
  M = n_mel * frames
  P = cfg["prenet_dim"]; A_rnn = cfg["attention_rnn_dim"]; D_rnn = cfg["decoder_rnn_dim"]
  A_dim = cfg["attention_dim"]; F_loc = cfg["attention_location_n_filters"]
  K = cfg["attention_location_kernel_size"]
  pad = (K - 1) // 2
  T_steps = dec_in.shape[0]
  dot = functools.partial(jnp.dot, precision=jax.lax.Precision.HIGHEST)

  attn_h = jnp.zeros((B, A_rnn)); attn_c = jnp.zeros((B, A_rnn))
  dec_h = jnp.zeros((B, D_rnn)); dec_c = jnp.zeros((B, D_rnn))
  attn_w = jnp.zeros((B, T_in)); attn_w_cum = jnp.zeros((B, T_in))
  ctx = jnp.zeros((B, E))
  proc_mem = dot(memory, w["memory_w"])

  mels, gates_o, aligns = [], [], []
  for t in range(T_steps):
    x = dec_in[t]
    h = jnp.maximum(dot(x, w["pre_w1"]), 0.0) * pmask1[t]
    h = jnp.maximum(dot(h, w["pre_w2"]), 0.0) * pmask2[t]

    g = (dot(h, w["attn_wih"][:P]) + dot(ctx, w["attn_wih"][P:])
         + dot(attn_h, w["attn_whh"]) + w["attn_b"])
    i_g = jax.nn.sigmoid(g[:, :A_rnn]); f_g = jax.nn.sigmoid(g[:, A_rnn:2 * A_rnn])
    g_g = jnp.tanh(g[:, 2 * A_rnn:3 * A_rnn]); o_g = jax.nn.sigmoid(g[:, 3 * A_rnn:])
    attn_c = f_g * attn_c + i_g * g_g
    attn_h = o_g * jnp.tanh(attn_c) * admask[t]

    aw_cat = jnp.stack([attn_w, attn_w_cum], axis=1)                 # (B, 2, T_in)
    aw_pad = jnp.pad(aw_cat, ((0, 0), (0, 0), (pad, pad)))
    proc_loc = jnp.zeros((B, T_in, F_loc))
    for k in range(K):
      for c in range(2):
        proc_loc = proc_loc + (aw_pad[:, c, k:k + T_in][:, :, None]
                               * w["loc_conv"][k, c][None, None, :])
    proc_att = dot(proc_loc, w["loc_dense"])
    pq = dot(attn_h, w["query_w"])
    energies = jnp.sum(jnp.tanh(pq[:, None, :] + proc_att + proc_mem)
                       * w["v_w"].reshape(1, 1, A_dim), axis=-1) + mask_add
    aw_new = jax.nn.softmax(energies, axis=1)
    ctx = jnp.sum(aw_new[:, :, None] * memory, axis=1)
    attn_w = aw_new
    attn_w_cum = attn_w_cum + aw_new

    dg = (dot(attn_h, w["dec_wih"][:A_rnn]) + dot(ctx, w["dec_wih"][A_rnn:])
          + dot(dec_h, w["dec_whh"]) + w["dec_b"])
    di_g = jax.nn.sigmoid(dg[:, :D_rnn]); df_g = jax.nn.sigmoid(dg[:, D_rnn:2 * D_rnn])
    dg_g = jnp.tanh(dg[:, 2 * D_rnn:3 * D_rnn]); do_g = jax.nn.sigmoid(dg[:, 3 * D_rnn:])
    dec_c = df_g * dec_c + di_g * dg_g
    dec_h = do_g * jnp.tanh(dec_c) * ddmask[t]

    mel = dot(dec_h, w["proj_w"][:D_rnn]) + dot(ctx, w["proj_w"][D_rnn:]) + w["proj_b"]
    gate = dot(dec_h, w["gate_w"][:D_rnn]) + dot(ctx, w["gate_w"][D_rnn:]) + w["gate_b"]
    mels.append(mel); gates_o.append(gate); aligns.append(aw_new)

  mel_seq = jnp.stack(mels); gate_seq = jnp.stack(gates_o); align_seq = jnp.stack(aligns)
  alignments = jnp.transpose(align_seq, (1, 0, 2))
  gate_outputs = jnp.transpose(gate_seq[:, :, 0], (1, 0))
  mel_out = jnp.transpose(mel_seq, (1, 0, 2)).reshape(B, T_steps * frames, n_mel)
  mel_out = jnp.transpose(mel_out, (0, 2, 1))
  return mel_out, gate_outputs, alignments


# --------------------------------------------------------------------------- params
def init_weights(cfg, key):
  n_mel = cfg["n_mel_channels"]; frames = cfg["n_frames_per_step"]
  M = n_mel * frames
  E = cfg["encoder_embedding_dim"]; P = cfg["prenet_dim"]
  A_rnn = cfg["attention_rnn_dim"]; D_rnn = cfg["decoder_rnn_dim"]
  A_dim = cfg["attention_dim"]; F_loc = cfg["attention_location_n_filters"]
  K = cfg["attention_location_kernel_size"]

  keys = jax.random.split(key, 20)
  nrm = lambda k, shp, s=0.1: (s * jax.random.normal(k, shp)).astype(jnp.float32)

  loc_conv_t = nrm(keys[0], (F_loc, 2, K))       # Conv1d weight (out, in=2, K), bias=False
  loc_conv = jnp.transpose(loc_conv_t, (2, 1, 0))   # (K, 2, F_loc)
  loc_dense_t = nrm(keys[1], (A_dim, F_loc))     # location_dense weight (out, in), bias=False
  loc_dense = loc_dense_t.T                      # (F_loc, A_dim)

  return {
      "pre_w1":   nrm(keys[2], (M, P)),
      "pre_w2":   nrm(keys[3], (P, P)),
      "attn_wih": nrm(keys[4], (P + E, 4 * A_rnn)),
      "attn_whh": nrm(keys[5], (A_rnn, 4 * A_rnn)),
      "attn_b":   nrm(keys[6], (1, 4 * A_rnn), 0.05),   # b_ih + b_hh combined
      "query_w":  nrm(keys[7], (A_rnn, A_dim)),
      "memory_w": nrm(keys[8], (E, A_dim)),
      "v_w":      nrm(keys[9], (1, A_dim)),
      "loc_conv": loc_conv,
      "loc_dense": loc_dense,
      "dec_wih":  nrm(keys[10], (A_rnn + E, 4 * D_rnn)),
      "dec_whh":  nrm(keys[11], (D_rnn, 4 * D_rnn)),
      "dec_b":    nrm(keys[12], (1, 4 * D_rnn), 0.05),
      "proj_w":   nrm(keys[13], (D_rnn + E, M)),
      "proj_b":   nrm(keys[14], (1, M), 0.05),
      "gate_w":   nrm(keys[15], (D_rnn + E, 1)),
      "gate_b":   nrm(keys[16], (1, 1), 0.05),
  }


# --------------------------------------------------------------------------- main
if __name__ == "__main__":
  cfg = dict(
      n_mel_channels=8, n_frames_per_step=1,
      encoder_embedding_dim=32, attention_dim=32,
      attention_location_n_filters=4, attention_location_kernel_size=5,
      attention_rnn_dim=32, decoder_rnn_dim=32, prenet_dim=32,
      max_decoder_steps=1000, gate_threshold=0.5,
      p_attention_dropout=0.1, p_decoder_dropout=0.1, early_stopping=True,
  )
  # B=16 with batch_block=8 exercises the "parallel" batch grid axis
  # (2 batch blocks x 2 time chunks) while respecting the (8,128) tiling rule.
  B, T_in, T_out = 16, 16, 8

  root = jax.random.PRNGKey(0)
  k_w, k_mem, k_dec, k_drop = jax.random.split(root, 4)

  weights = init_weights(cfg, k_w)
  memory = (0.5 * jax.random.normal(
      k_mem, (B, T_in, cfg["encoder_embedding_dim"]))).astype(jnp.float32)
  decoder_inputs = (0.5 * jax.random.normal(
      k_dec, (B, cfg["n_mel_channels"], T_out))).astype(jnp.float32)
  memory_lengths = jnp.array([T_in - (i % 5) for i in range(B)], dtype=jnp.int32)

  mel, gate, align, aux = decoder_forward(
      cfg, weights, memory, decoder_inputs, memory_lengths, k_drop,
      t_chunk=4, batch_block=8)
  jax.block_until_ready((mel, gate, align))

  dec_in, pmask1, pmask2, admask, ddmask, mask_add = aux
  mel_r, gate_r, align_r = decoder_reference(
      cfg, weights, memory, dec_in, mask_add, pmask1, pmask2, admask, ddmask)

  assert mel.shape == (B, cfg["n_mel_channels"], T_out)
  assert gate.shape == (B, T_out)
  assert align.shape == (B, T_out, T_in)
  for name, a, b in (("mel", mel, mel_r), ("gate", gate, gate_r), ("align", align, align_r)):
    if not bool(jnp.allclose(a, b, atol=2e-2, rtol=2e-2)):
      raise AssertionError(f"{name} mismatch: max abs diff "
                           f"{float(jnp.max(jnp.abs(a - b)))}")

  print("KERNEL_OK")
</pallas_src>

<mosaic_0001>
module attributes {stable_mosaic.version = 11 : i64} {
  func.func @_precompute_kernel(%arg0: memref<128x8xf32, #tpu.memory_space<vmem>>, %arg1: memref<128x32xf32, #tpu.memory_space<vmem>>, %arg2: memref<128x32xf32, #tpu.memory_space<vmem>>, %arg3: memref<8x32xf32, #tpu.memory_space<vmem>>, %arg4: memref<32x32xf32, #tpu.memory_space<vmem>>, %arg5: memref<32x128xf32, #tpu.memory_space<vmem>>, %arg6: memref<1x128xf32, #tpu.memory_space<vmem>>, %arg7: memref<256x32xf32, #tpu.memory_space<vmem>>, %arg8: memref<32x32xf32, #tpu.memory_space<vmem>>, %arg9: memref<128x128xf32, #tpu.memory_space<vmem>>, %arg10: memref<256x32xf32, #tpu.memory_space<vmem>>) attributes {dimension_semantics = [], scalar_prefetch = 0 : i64, scratch_operands = 0 : i64, tpu.core_type = #tpu.core_type<tc>} {
    %c0 = arith.constant 0 : index
    %c0_0 = arith.constant 0 : index
    %0 = vector.load %arg0[%c0, %c0_0] : memref<128x8xf32, #tpu.memory_space<vmem>>, vector<128x8xf32>
    %c0_1 = arith.constant 0 : index
    %c0_2 = arith.constant 0 : index
    %1 = vector.load %arg3[%c0_1, %c0_2] : memref<8x32xf32, #tpu.memory_space<vmem>>, vector<8x32xf32>
    %cst = arith.constant dense<0.000000e+00> : vector<128x32xf32>
    %2 = tpu.matmul %0, %1, %cst {dimension_numbers = #tpu.dot_dimension_numbers<[1], [0], [0], [1], [0, 0, 1, 1], [], []>} : vector<128x8xf32>, vector<8x32xf32>, vector<128x32xf32> -> vector<128x32xf32>
    %cst_3 = arith.constant 0.000000e+00 : f32
    %3 = vector.broadcast %cst_3 : f32 to vector<128x32xf32>
    %4 = arith.maximumf %2, %3 : vector<128x32xf32>
    %c0_4 = arith.constant 0 : index
    %c0_5 = arith.constant 0 : index
    %5 = vector.load %arg1[%c0_4, %c0_5] : memref<128x32xf32, #tpu.memory_space<vmem>>, vector<128x32xf32>
    %6 = arith.mulf %4, %5 : vector<128x32xf32>
    %c0_6 = arith.constant 0 : index
    %c0_7 = arith.constant 0 : index
    %7 = vector.load %arg4[%c0_6, %c0_7] : memref<32x32xf32, #tpu.memory_space<vmem>>, vector<32x32xf32>
    %cst_8 = arith.constant dense<0.000000e+00> : vector<128x32xf32>
    %8 = tpu.matmul %6, %7, %cst_8 {dimension_numbers = #tpu.dot_dimension_numbers<[1], [0], [0], [1], [0, 0, 1, 1], [], []>} : vector<128x32xf32>, vector<32x32xf32>, vector<128x32xf32> -> vector<128x32xf32>
    %cst_9 = arith.constant 0.000000e+00 : f32
    %9 = vector.broadcast %cst_9 : f32 to vector<128x32xf32>
    %10 = arith.maximumf %8, %9 : vector<128x32xf32>
    %c0_10 = arith.constant 0 : index
    %c0_11 = arith.constant 0 : index
    %11 = vector.load %arg2[%c0_10, %c0_11] : memref<128x32xf32, #tpu.memory_space<vmem>>, vector<128x32xf32>
    %12 = arith.mulf %10, %11 : vector<128x32xf32>
    %c0_12 = arith.constant 0 : index
    %c0_13 = arith.constant 0 : index
    %13 = vector.load %arg5[%c0_12, %c0_13] : memref<32x128xf32, #tpu.memory_space<vmem>>, vector<32x128xf32>
    %cst_14 = arith.constant dense<0.000000e+00> : vector<128x128xf32>
    %14 = tpu.matmul %12, %13, %cst_14 {dimension_numbers = #tpu.dot_dimension_numbers<[1], [0], [0], [1], [0, 0, 1, 1], [], []>} : vector<128x32xf32>, vector<32x128xf32>, vector<128x128xf32> -> vector<128x128xf32>
    %c0_15 = arith.constant 0 : index
    %c0_16 = arith.constant 0 : index
    %15 = vector.load %arg6[%c0_15, %c0_16] : memref<1x128xf32, #tpu.memory_space<vmem>>, vector<1x128xf32>
    %16 = vector.broadcast %15 : vector<1x128xf32> to vector<128x128xf32>
    %17 = arith.addf %14, %16 : vector<128x128xf32>
    %c0_17 = arith.constant 0 : index
    %c0_18 = arith.constant 0 : index
    %18 = vector.load %arg9[%c0_17, %c0_18] : memref<128x128xf32, #tpu.memory_space<vmem>>, vector<128x128xf32>
    tpu.vector_store %arg9[%c0_17, %c0_18], %17 {strides = array<i32>} : memref<128x128xf32, #tpu.memory_space<vmem>>, vector<128x128xf32>,
    %c0_19 = arith.constant 0 : index
    %c0_20 = arith.constant 0 : index
    %19 = vector.load %arg7[%c0_19, %c0_20] : memref<256x32xf32, #tpu.memory_space<vmem>>, vector<256x32xf32>
    %c0_21 = arith.constant 0 : index
    %c0_22 = arith.constant 0 : index
    %20 = vector.load %arg8[%c0_21, %c0_22] : memref<32x32xf32, #tpu.memory_space<vmem>>, vector<32x32xf32>
    %cst_23 = arith.constant dense<0.000000e+00> : vector<256x32xf32>
    %21 = tpu.matmul %19, %20, %cst_23 {dimension_numbers = #tpu.dot_dimension_numbers<[1], [0], [0], [1], [0, 0, 1, 1], [], []>} : vector<256x32xf32>, vector<32x32xf32>, vector<256x32xf32> -> vector<256x32xf32>
    %c0_24 = arith.constant 0 : index
    %c0_25 = arith.constant 0 : index
    %22 = vector.load %arg10[%c0_24, %c0_25] : memref<256x32xf32, #tpu.memory_space<vmem>>, vector<256x32xf32>
    tpu.vector_store %arg10[%c0_24, %c0_25], %21 {strides = array<i32>} : memref<256x32xf32, #tpu.memory_space<vmem>>, vector<256x32xf32>,
    return
  }
}

</mosaic_0001>

<bundles_post_ra>
// kernel: tpu_custom_call.1
= control target key start
LH: loop header
LB: loop body
LE: loop exit
PB: predicated region body
PF: predicated region fallthrough
CT: control target
= control target key end

     0   :  { %vm52_vm0 = vcmask 64512   ;;  %s2077_s0 = inlined_call_operand.vmem [shape: f32[128,8], index: 0, kind: input, shape index: {}]   ;;  %s2078_s1 = inlined_call_operand.vmem [shape: f32[128,32], index: 1, kind: input, shape index: {}]   ;;  %s2079_s2 = inlined_call_operand.vmem [shape: f32[128,32], index: 2, kind: input, shape index: {}]   ;;  %s2080_s3 = inlined_call_operand.vmem [shape: f32[8,32], index: 3, kind: input, shape index: {}]   ;;  %s2081_s4 = inlined_call_operand.vmem [shape: f32[32,32], index: 4, kind: input, shape index: {}]   ;;  %s2082_s5 = inlined_call_operand.vmem [shape: f32[32,128], index: 5, kind: input, shape index: {}]   ;;  %s2083_s6 = inlined_call_operand.vmem [shape: f32[1,128], index: 6, kind: input, shape index: {}]   ;;  %s2084_s7 = inlined_call_operand.vmem [shape: f32[256,32], index: 7, kind: input, shape index: {}]   ;;  %s2085_s8 = inlined_call_operand.vmem [shape: f32[32,32], index: 8, kind: input, shape index: {}]   ;;  %s2086_s9 = inlined_call_operand.hbm [shape: f32[128,128], index: 9, kind: output, shape index: {0}]   ;;  %s2087_s10 = inlined_call_operand.vmem [shape: f32[256,32], index: 10, kind: output, shape index: {1}]  }
   0x1   :  { %v51_v0 = vld [vmem:[%s2080_s3] sm:$0xff]  ;;  %v36_v2 = vld [vmem:[%s2077_s0 + $0x8] sm:$0xff]  ;;  %v37_v3 = vld [vmem:[%s2077_s0 + $0x10] sm:$0xff] }
   0x2   :  { %v35_v1 = vld [vmem:[%s2077_s0] sm:$0xff]  ;;  %1343 = vmatprep.subr.mxu0 %v51_v0  ;;  %v38_v4 = vld [vmem:[%s2077_s0 + $0x18] sm:$0xff]  ;;  %v296_v7 = vld [vmem:[%s2081_s4 + $0x10] sm:$0xff] }
   0x3   :  { %1345 = vmatprep.mubr.msk.f32.mxu0 %vm52_vm0, %v35_v1  ;;  %1344 = vmatpush3.msra.mxu0 %v51_v0  ;;  %v39_v5 = vld [vmem:[%s2077_s0 + $0x20] sm:$0xff]  ;;  %v297_v6 = vld [vmem:[%s2081_s4 + $0x18] sm:$0xff] }
   0x4   :  { %1346 = vmatmul.mubr.msk.f32.vlgmr.msra.gmra.mxu0 %vm52_vm0, %v36_v2  ;;  %1369 = vmatprep.subr.mxu0 %v297_v6 }
   0x5   :  { %1348 = vmatprep.mubr.msk.f32.mxu0 %vm52_vm0, %v37_v3  ;;  %1489 = vmatprep.subr.mxu1 %v297_v6 }
   0x6   :  { %1493 = vmatpush3.msra.mxu1 %v297_v6 }
   0x8   :  { %1349 = vmatmul.mubr.msk.f32.gmra.mxu0 %vm52_vm0, %v38_v4 }
   0x9   :  { %16 = vsyncpa [#allocation3], 0  ;;  %1351 = vmatprep.mubr.msk.f32.mxu0 %vm52_vm0, %v39_v5  ;;  %v40_v8 = vld [vmem:[%s2077_s0 + $0x28] sm:$0xff]  ;;  %1370 = vmatpush3.msra.mxu0 %v297_v6  ;;  %v41_v10 = vld [vmem:[%s2077_s0 + $0x30] sm:$0xff]  ;;  %vm298_vm1 = vcmask 261120  }
   0xa   :  { %v295_v9 = vld [vmem:[%s2081_s4 + $0x8] sm:$0xff]  ;;  %1371 = vmatprep.subr.mxu0 %v296_v7  ;;  %1490 = vmatprep.subr.mxu1 %v296_v7  ;;  %v294_v11 = vld [vmem:[%s2081_s4] sm:$0xff]  ;;  %v42_v12 = vld [vmem:[%s2077_s0 + $0x38] sm:$0xff] }
   0xb   :  { %1372 = vmatpush3.msra.mxu0 %v296_v7  ;;  %1494 = vmatpush3.msra.mxu1 %v296_v7  ;;  %v43_v13 = vld [vmem:[%s2077_s0 + $0x40] sm:$0xff]  ;;  %v44_v14 = vld [vmem:[%s2077_s0 + $0x48] sm:$0xff]  ;;  %v45_v15 = vld [vmem:[%s2077_s0 + $0x50] sm:$0xff] }
   0xc   :  { %1352 = vmatmul.mubr.msk.f32.gmra.mxu0 %vm52_vm0, %v40_v8  ;;  %1373 = vmatprep.subr.mxu0 %v295_v9  ;;  %v46_v16 = vld [vmem:[%s2077_s0 + $0x58] sm:$0xff]  ;;  %v47_v17 = vld [vmem:[%s2077_s0 + $0x60] sm:$0xff]  ;;  %v48_v18 = vld [vmem:[%s2077_s0 + $0x68] sm:$0xff] }
   0xd   :  { %1354 = vmatprep.mubr.msk.f32.mxu0 %vm52_vm0, %v41_v10  ;;  %1374 = vmatpush3.msra.mxu0 %v295_v9  ;;  %v49_v19 = vld [vmem:[%s2077_s0 + $0x70] sm:$0xff]  ;;  %v50_v20 = vld [vmem:[%s2077_s0 + $0x78] sm:$0xff]  ;;  %v262_v26 = vld [vmem:[%s2078_s1] sm:$0xff] }
   0xe   :  { %1375 = vmatprep.subr.mxu0 %v294_v11  ;;  %1491 = vmatprep.subr.mxu1 %v295_v9  ;;  %v1662_v21 = vld [vmem:[%s2085_s8 + $0x18] sm:$0xff]  ;;  %v263_v27 = vld [vmem:[%s2078_s1 + $0x8] sm:$0xff]  ;;  %v264_v34 = vld [vmem:[%s2078_s1 + $0x10] sm:$0xff] }
   0xf   :  { %1376 = vmatpush3.msra.mxu0 %v294_v11  ;;  %1495 = vmatpush3.msra.mxu1 %v295_v9  ;;  %v543_v22 = vld [vmem:[%s2082_s5 + $0x18] sm:$0xff]  ;;  %v542_v37 = vld [vmem:[%s2082_s5 + $0x10] sm:$0xff]  ;;  %v541_v40 = vld [vmem:[%s2082_s5 + $0x8] sm:$0xff] }
  0x10   :  { %1355 = vmatmul.mubr.msk.f32.gmra.mxu0 %vm52_vm0, %v42_v12  ;;  %1492 = vmatprep.subr.mxu1 %v294_v11  ;;  %v265_v35 = vld [vmem:[%s2078_s1 + $0x18] sm:$0xff]  ;;  %v266_v44 = vld [vmem:[%s2078_s1 + $0x20] sm:$0xff]  ;;  %v267_v45 = vld [vmem:[%s2078_s1 + $0x28] sm:$0xff] }
  0x11   :  { %1357 = vmatprep.mubr.msk.f32.mxu0 %vm52_vm0, %v43_v13  ;;  %1496 = vmatpush3.msra.mxu1 %v294_v11  ;;  %v268_v52 = vld [vmem:[%s2078_s1 + $0x30] sm:$0xff]  ;;  %v269_v53 = vld [vmem:[%s2078_s1 + $0x38] sm:$0xff]  ;;  %v270_v60 = vld [vmem:[%s2078_s1 + $0x40] sm:$0xff] }
  0x12   :  { %1433 = vmatprep.subr.mxu1 %v1662_v21  ;;  %1401 = vmatprep.subr.mxu0 %v543_v22  ;;  %v271_v61 = vld [vmem:[%s2078_s1 + $0x48] sm:$0xff]  ;;  %v272_v4 = vld [vmem:[%s2078_s1 + $0x50] sm:$0xff]  ;;  %v273_v5 = vld [vmem:[%s2078_s1 + $0x58] sm:$0xff] }
  0x13   :  { %v794_v7 = vld [vmem:[%s2085_s8 + $0x10] sm:$0xff]  ;;  %v793_v10 = vld [vmem:[%s2085_s8 + $0x8] sm:$0xff] }
  0x14   :  { %1358 = vmatmul.mubr.msk.f32.gmra.mxu0 %vm52_vm0, %v44_v14  ;;  %v274_v14 = vld [vmem:[%s2078_s1 + $0x60] sm:$0xff] }
  0x15   :  { %1360 = vmatprep.mubr.msk.f32.mxu0 %vm52_vm0, %v45_v15  ;;  %v275_v15 = vld [vmem:[%s2078_s1 + $0x68] sm:$0xff] }
  0x18   :  { %1361 = vmatmul.mubr.msk.f32.gmra.mxu0 %vm52_vm0, %v46_v16 }
  0x19   :  { %1363 = vmatprep.mubr.msk.f32.mxu0 %vm52_vm0, %v47_v17  ;;  %v792_v17 = vld [vmem:[%s2085_s8] sm:$0xff] }
  0x1c   :  { %1364 = vmatmul.mubr.msk.f32.gmra.mxu0 %vm52_vm0, %v48_v18 }
  0x1d   :  { %1366 = vmatprep.mubr.msk.f32.mxu0 %vm52_vm0, %v49_v19 }
  0x20   :  { %1367 = vmatmul.mubr.msk.f32.gmra.mxu0 %vm52_vm0, %v50_v20 }
  0xc4   :  { %v1347_v23 = vpop.f32.mrf.mxu0 }
  0xc5   :  { %v247_v24 = vmax.f32 %v1347_v23, 0.0  ;;  %v276_v23 = vld [vmem:[%s2078_s1 + $0x70] sm:$0xff] }
  0xc6   :  { %v167_v25 = vpop.f32.mrf.mxu0 }
  0xc7   :  { %v246_v28 = vmax.f32 %v167_v25, 0.0  ;;  %v279_v31 = vmul.f32 %v263_v27, %v247_v24  ;;  %v277_v24 = vld [vmem:[%s2078_s1 + $0x78] sm:$0xff] }
  0xc8   :  { %v1350_v29 = vpop.f32.mrf.mxu0 }
  0xc9   :  { %v278_v30 = vmul.f32 %v262_v26, %v246_v28  ;;  %v249_v32 = vmax.f32 %v1350_v29, 0.0  ;;  %v760_v28 = vld [vmem:[%s2084_s7] sm:$0xff]  ;;  %v761_v29 = vld [vmem:[%s2084_s7 + $0x8] sm:$0xff] }
  0xca   :  { %v177_v33 = vpop.f32.mrf.mxu0 }
  0xcb   :  { %v248_v36 = vmax.f32 %v177_v33, 0.0  ;;  %1377 = vmatprep.mubr.msk.f32.mxu0 %vm298_vm1, %v278_v30  ;;  %v281_v41 = vmul.f32 %v265_v35, %v249_v32  ;;  %v762_v30 = vld [vmem:[%s2084_s7 + $0x10] sm:$0xff]  ;;  %v764_v32 = vld [vmem:[%s2084_s7 + $0x20] sm:$0xff]  ;;  %v765_v33 = vld [vmem:[%s2084_s7 + $0x28] sm:$0xff] }
  0xcc   :  { %v1353_v38 = vpop.f32.mrf.mxu0  ;;  %1378 = vmatmul.mubr.msk.f32.vlgmr.msra.gmra.mxu0 %vm298_vm1, %v279_v31  ;;  %v763_v31 = vld [vmem:[%s2084_s7 + $0x18] sm:$0xff] }
  0xcd   :  { %v280_v39 = vmul.f32 %v264_v34, %v248_v36  ;;  %1402 = vmatpush3.msra.mxu0 %v543_v22  ;;  %v251_v42 = vmax.f32 %v1353_v38, 0.0  ;;  %v766_v34 = vld [vmem:[%s2084_s7 + $0x30] sm:$0xff]  ;;  %v767_v35 = vld [vmem:[%s2084_s7 + $0x38] sm:$0xff]  ;;  %v768_v36 = vld [vmem:[%s2084_s7 + $0x40] sm:$0xff] }
  0xce   :  { %v187_v43 = vpop.f32.mrf.mxu0  ;;  %1403 = vmatprep.subr.mxu0 %v542_v37  ;;  %v770_v38 = vld [vmem:[%s2084_s7 + $0x50] sm:$0xff] }
  0xcf   :  { %v250_v46 = vmax.f32 %v187_v43, 0.0  ;;  %1380 = vmatprep.mubr.msk.f32.mxu0 %vm298_vm1, %v280_v39  ;;  %1404 = vmatpush3.msra.mxu0 %v542_v37  ;;  %v283_v49 = vmul.f32 %v267_v45, %v251_v42  ;;  %v769_v37 = vld [vmem:[%s2084_s7 + $0x48] sm:$0xff]  ;;  %v771_v39 = vld [vmem:[%s2084_s7 + $0x58] sm:$0xff]  ;;  %v774_v42 = vld [vmem:[%s2084_s7 + $0x70] sm:$0xff] }
  0xd0   :  { %v1356_v47 = vpop.f32.mrf.mxu0  ;;  %1381 = vmatmul.mubr.msk.f32.gmra.mxu0 %vm298_vm1, %v281_v41  ;;  %1405 = vmatprep.subr.mxu0 %v541_v40  ;;  %v773_v41 = vld [vmem:[%s2084_s7 + $0x68] sm:$0xff]  ;;  %v775_v43 = vld [vmem:[%s2084_s7 + $0x78] sm:$0xff]  ;;  %v776_v45 = vld [vmem:[%s2084_s7 + $0x80] sm:$0xff] }
  0xd1   :  { %v282_v48 = vmul.f32 %v266_v44, %v250_v46  ;;  %1406 = vmatpush3.msra.mxu0 %v541_v40  ;;  %v253_v50 = vmax.f32 %v1356_v47, 0.0  ;;  %v772_v40 = vld [vmem:[%s2084_s7 + $0x60] sm:$0xff]  ;;  %v777_v46 = vld [vmem:[%s2084_s7 + $0x88] sm:$0xff]  ;;  %v778_v47 = vld [vmem:[%s2084_s7 + $0x90] sm:$0xff] }
  0xd2   :  { %v197_v51 = vpop.f32.mrf.mxu0  ;;  %v540_v44 = vld [vmem:[%s2082_s5] sm:$0xff] }
  0xd3   :  { %v252_v54 = vmax.f32 %v197_v51, 0.0  ;;  %1383 = vmatprep.mubr.msk.f32.mxu0 %vm298_vm1, %v282_v48  ;;  %v285_v57 = vmul.f32 %v269_v53, %v253_v50  ;;  %1407 = vmatprep.subr.mxu0 %v540_v44  ;;  %v779_v48 = vld [vmem:[%s2084_s7 + $0x98] sm:$0xff]  ;;  %v781_v50 = vld [vmem:[%s2084_s7 + $0xa8] sm:$0xff]  ;;  %v782_v51 = vld [vmem:[%s2084_s7 + $0xb0] sm:$0xff] }
  0xd4   :  { %v1359_v55 = vpop.f32.mrf.mxu0  ;;  %1384 = vmatmul.mubr.msk.f32.gmra.mxu0 %vm298_vm1, %v283_v49  ;;  %v780_v49 = vld [vmem:[%s2084_s7 + $0xa0] sm:$0xff] }
  0xd5   :  { %v284_v56 = vmul.f32 %v268_v52, %v252_v54  ;;  %v255_v58 = vmax.f32 %v1359_v55, 0.0  ;;  %1408 = vmatpush3.msra.mxu0 %v540_v44  ;;  %v783_v52 = vld [vmem:[%s2084_s7 + $0xb8] sm:$0xff]  ;;  %v784_v53 = vld [vmem:[%s2084_s7 + $0xc0] sm:$0xff]  ;;  %v785_v54 = vld [vmem:[%s2084_s7 + $0xc8] sm:$0xff] }
  0xd6   :  { %v207_v59 = vpop.f32.mrf.mxu0  ;;  %v786_v55 = vld [vmem:[%s2084_s7 + $0xd0] sm:$0xff] }
  0xd7   :  { %v254_v62 = vmax.f32 %v207_v59, 0.0  ;;  %1386 = vmatprep.mubr.msk.f32.mxu0 %vm298_vm1, %v284_v56  ;;  %v287_v1 = vmul.f32 %v271_v61, %v255_v58  ;;  %v787_v56 = vld [vmem:[%s2084_s7 + $0xd8] sm:$0xff]  ;;  %v789_v58 = vld [vmem:[%s2084_s7 + $0xe8] sm:$0xff]  ;;  %v790_v59 = vld [vmem:[%s2084_s7 + $0xf0] sm:$0xff] }
  0xd8   :  { %v1362_v63 = vpop.f32.mrf.mxu0  ;;  %1387 = vmatmul.mubr.msk.f32.gmra.mxu0 %vm298_vm1, %v285_v57  ;;  %v788_v57 = vld [vmem:[%s2084_s7 + $0xe0] sm:$0xff] }
  0xd9   :  { %v286_v0 = vmul.f32 %v270_v60, %v254_v62  ;;  %v257_v2 = vmax.f32 %v1362_v63, 0.0  ;;  %v791_v60 = vld [vmem:[%s2084_s7 + $0xf8] sm:$0xff] }
  0xda   :  { %v217_v3 = vpop.f32.mrf.mxu0 }
  0xdb   :  { %v256_v6 = vmax.f32 %v217_v3, 0.0  ;;  %1389 = vmatprep.mubr.msk.f32.mxu1 %vm298_vm1, %v286_v0  ;;  %v289_v11 = vmul.f32 %v273_v5, %v257_v2  ;;  %v508_v0 = vld [vmem:[%s2079_s2] sm:$0xff] }
  0xdc   :  { %v1365_v8 = vpop.f32.mrf.mxu0  ;;  %1390 = vmatmul.mubr.msk.f32.vlgmr.msra.gmra.mxu1 %vm298_vm1, %v287_v1  ;;  %v509_v1 = vld [vmem:[%s2079_s2 + $0x8] sm:$0xff] }
  0xdd   :  { %v288_v9 = vmul.f32 %v272_v4, %v256_v6  ;;  %1434 = vmatpush3.msra.mxu1 %v1662_v21  ;;  %v259_v12 = vmax.f32 %v1365_v8, 0.0  ;;  %v510_v8 = vld [vmem:[%s2079_s2 + $0x10] sm:$0xff] }
  0xde   :  { %v227_v13 = vpop.f32.mrf.mxu0  ;;  %1435 = vmatprep.subr.mxu1 %v794_v7 }
  0xdf   :  { %v258_v16 = vmax.f32 %v227_v13, 0.0  ;;  %1392 = vmatprep.mubr.msk.f32.mxu1 %vm298_vm1, %v288_v9  ;;  %1436 = vmatpush3.msra.mxu1 %v794_v7  ;;  %v291_v20 = vmul.f32 %v275_v15, %v259_v12  ;;  %v511_v9 = vld [vmem:[%s2079_s2 + $0x18] sm:$0xff] }
  0xe0   :  { %v1368_v18 = vpop.f32.mrf.mxu0  ;;  %1393 = vmatmul.mubr.msk.f32.gmra.mxu1 %vm298_vm1, %v289_v11  ;;  %1437 = vmatprep.subr.mxu1 %v793_v10 }
  0xe1   :  { %v290_v19 = vmul.f32 %v274_v14, %v258_v16  ;;  %1438 = vmatpush3.msra.mxu1 %v793_v10  ;;  %v261_v21 = vmax.f32 %v1368_v18, 0.0  ;;  %v512_v16 = vld [vmem:[%s2079_s2 + $0x20] sm:$0xff] }
  0xe2   :  { %v237_v22 = vpop.f32.mrf.mxu0  ;;  %1439 = vmatprep.subr.mxu1 %v792_v17 }
  0xe3   :  { %v260_v25 = vmax.f32 %v237_v22, 0.0  ;;  %1395 = vmatprep.mubr.msk.f32.mxu1 %vm298_vm1, %v290_v19  ;;  %1440 = vmatpush3.msra.mxu1 %v792_v17  ;;  %v293_v27 = vmul.f32 %v277_v24, %v261_v21  ;;  %v513_v17 = vld [vmem:[%s2079_s2 + $0x28] sm:$0xff]  ;;  %v514_v24 = vld [vmem:[%s2079_s2 + $0x30] sm:$0xff] }
  0xe4   :  { %1396 = vmatmul.mubr.msk.f32.gmra.mxu1 %vm298_vm1, %v291_v20 }
  0xe5   :  { %v292_v26 = vmul.f32 %v276_v23, %v260_v25  ;;  %v515_v25 = vld [vmem:[%s2079_s2 + $0x38] sm:$0xff] }
  0xe7   :  { %1398 = vmatprep.mubr.msk.f32.mxu1 %vm298_vm1, %v292_v26 }
  0xe8   :  { %1399 = vmatmul.mubr.msk.f32.gmra.mxu1 %vm298_vm1, %v293_v27 }
  0xe9   :  { %1441 = vmatprep.mubr.msk.f32.mxu1 %vm298_vm1, %v760_v28 }
  0xec   :  { %1442 = vmatmul.mubr.msk.f32.vlgmr.msra.gmra.mxu1 %vm298_vm1, %v761_v29 }
  0xed   :  { %1444 = vmatprep.mubr.msk.f32.mxu1 %vm298_vm1, %v762_v30 }
  0xf0   :  { %1445 = vmatmul.mubr.msk.f32.gmra.mxu1 %vm298_vm1, %v763_v31 }
  0xf1   :  { %1447 = vmatprep.mubr.msk.f32.mxu1 %vm298_vm1, %v764_v32  ;;  %v516_v32 = vld [vmem:[%s2079_s2 + $0x40] sm:$0xff] }
  0xf4   :  { %1448 = vmatmul.mubr.msk.f32.gmra.mxu1 %vm298_vm1, %v765_v33  ;;  %v517_v33 = vld [vmem:[%s2079_s2 + $0x48] sm:$0xff] }
  0xf5   :  { %1450 = vmatprep.mubr.msk.f32.mxu1 %vm298_vm1, %v766_v34 }
  0xf8   :  { %1451 = vmatmul.mubr.msk.f32.gmra.mxu1 %vm298_vm1, %v767_v35 }
  0xf9   :  { %1453 = vmatprep.mubr.msk.f32.mxu1 %vm298_vm1, %v768_v36 }
  0xfc   :  { %1454 = vmatmul.mubr.msk.f32.gmra.mxu1 %vm298_vm1, %v769_v37 }
  0xfd   :  { %1456 = vmatprep.mubr.msk.f32.mxu1 %vm298_vm1, %v770_v38 }
 0x100   :  { %1457 = vmatmul.mubr.msk.f32.gmra.mxu1 %vm298_vm1, %v771_v39 }
 0x101   :  { %1459 = vmatprep.mubr.msk.f32.mxu1 %vm298_vm1, %v772_v40  ;;  %v518_v40 = vld [vmem:[%s2079_s2 + $0x50] sm:$0xff] }
 0x104   :  { %1460 = vmatmul.mubr.msk.f32.gmra.mxu1 %vm298_vm1, %v773_v41  ;;  %v519_v41 = vld [vmem:[%s2079_s2 + $0x58] sm:$0xff] }
 0x105   :  { %1462 = vmatprep.mubr.msk.f32.mxu1 %vm298_vm1, %v774_v42 }
 0x108   :  { %1463 = vmatmul.mubr.msk.f32.gmra.mxu1 %vm298_vm1, %v775_v43 }
 0x109   :  { %1465 = vmatprep.mubr.msk.f32.mxu1 %vm298_vm1, %v776_v45 }
 0x10c   :  { %1466 = vmatmul.mubr.msk.f32.gmra.mxu1 %vm298_vm1, %v777_v46 }
 0x10d   :  { %1468 = vmatprep.mubr.msk.f32.mxu1 %vm298_vm1, %v778_v47 }
 0x110   :  { %1469 = vmatmul.mubr.msk.f32.gmra.mxu1 %vm298_vm1, %v779_v48  ;;  %v520_v48 = vld [vmem:[%s2079_s2 + $0x60] sm:$0xff] }
 0x111   :  { %1471 = vmatprep.mubr.msk.f32.mxu1 %vm298_vm1, %v780_v49  ;;  %v521_v49 = vld [vmem:[%s2079_s2 + $0x68] sm:$0xff] }
 0x114   :  { %1472 = vmatmul.mubr.msk.f32.gmra.mxu1 %vm298_vm1, %v781_v50 }
 0x115   :  { %1474 = vmatprep.mubr.msk.f32.mxu1 %vm298_vm1, %v782_v51 }
 0x118   :  { %1475 = vmatmul.mubr.msk.f32.gmra.mxu1 %vm298_vm1, %v783_v52 }
 0x119   :  { %1477 = vmatprep.mubr.msk.f32.mxu1 %vm298_vm1, %v784_v53 }
 0x11c   :  { %1478 = vmatmul.mubr.msk.f32.gmra.mxu1 %vm298_vm1, %v785_v54 }
 0x11d   :  { %1480 = vmatprep.mubr.msk.f32.mxu1 %vm298_vm1, %v786_v55 }
 0x120   :  { %1481 = vmatmul.mubr.msk.f32.gmra.mxu1 %vm298_vm1, %v787_v56  ;;  %v522_v56 = vld [vmem:[%s2079_s2 + $0x70] sm:$0xff] }
 0x121   :  { %1483 = vmatprep.mubr.msk.f32.mxu1 %vm298_vm1, %v788_v57  ;;  %v523_v57 = vld [vmem:[%s2079_s2 + $0x78] sm:$0xff] }
 0x124   :  { %1484 = vmatmul.mubr.msk.f32.gmra.mxu1 %vm298_vm1, %v789_v58 }
 0x125   :  { %1486 = vmatprep.mubr.msk.f32.mxu1 %vm298_vm1, %v790_v59 }
 0x128   :  { %1487 = vmatmul.mubr.msk.f32.gmra.mxu1 %vm298_vm1, %v791_v60 }
 0x18c   :  { %v1379_v61 = vpop.f32.mrf.mxu0 }
 0x18d   :  { %v493_v62 = vmax.f32 %v1379_v61, 0.0 }
 0x18e   :  { %v413_v63 = vpop.f32.mrf.mxu0 }
 0x18f   :  { %v492_v2 = vmax.f32 %v413_v63, 0.0  ;;  %v525_v5 = vmul.f32 %v509_v1, %v493_v62 }
 0x190   :  { %v1382_v3 = vpop.f32.mrf.mxu0 }
 0x191   :  { %v524_v4 = vmul.f32 %v508_v0, %v492_v2  ;;  %v495_v6 = vmax.f32 %v1382_v3, 0.0 }
 0x192   :  { %v423_v7 = vpop.f32.mrf.mxu0 }
 0x193   :  { %v494_v10 = vmax.f32 %v423_v7, 0.0  ;;  %1409 = vmatprep.mubr.msk.f32.mxu0 %vm298_vm1, %v524_v4  ;;  %v527_v13 = vmul.f32 %v511_v9, %v495_v6 }
 0x194   :  { %v1385_v11 = vpop.f32.mrf.mxu0  ;;  %1410 = vmatmul.mubr.msk.f32.vlgmr.msra.gmra.mxu0 %vm298_vm1, %v525_v5 }
 0x195   :  { %v526_v12 = vmul.f32 %v510_v8, %v494_v10  ;;  %v497_v14 = vmax.f32 %v1385_v11, 0.0 }
 0x196   :  { %v433_v15 = vpop.f32.mrf.mxu0 }
 0x197   :  { %v496_v18 = vmax.f32 %v433_v15, 0.0  ;;  %1412 = vmatprep.mubr.msk.f32.mxu0 %vm298_vm1, %v526_v12  ;;  %v529_v21 = vmul.f32 %v513_v17, %v497_v14 }
 0x198   :  { %v1388_v19 = vpop.f32.mrf.mxu0  ;;  %1413 = vmatmul.mubr.msk.f32.gmra.mxu0 %vm298_vm1, %v527_v13 }
 0x199   :  { %v528_v20 = vmul.f32 %v512_v16, %v496_v18  ;;  %v499_v22 = vmax.f32 %v1388_v19, 0.0 }
 0x19a   :  { %v443_v23 = vpop.f32.mrf.mxu0 }
 0x19b   :  { %v498_v26 = vmax.f32 %v443_v23, 0.0  ;;  %1415 = vmatprep.mubr.msk.f32.mxu0 %vm298_vm1, %v528_v20  ;;  %v531_v29 = vmul.f32 %v515_v25, %v499_v22 }
 0x19c   :  { %v1391_v27 = vpop.f32.mrf.mxu1  ;;  %1416 = vmatmul.mubr.msk.f32.gmra.mxu0 %vm298_vm1, %v529_v21 }
 0x19d   :  { %v530_v28 = vmul.f32 %v514_v24, %v498_v26  ;;  %v501_v30 = vmax.f32 %v1391_v27, 0.0 }
 0x19e   :  { %v453_v31 = vpop.f32.mrf.mxu1 }
 0x19f   :  { %v500_v34 = vmax.f32 %v453_v31, 0.0  ;;  %1418 = vmatprep.mubr.msk.f32.mxu0 %vm298_vm1, %v530_v28  ;;  %v533_v37 = vmul.f32 %v517_v33, %v501_v30 }
 0x1a0   :  { %v1394_v35 = vpop.f32.mrf.mxu1  ;;  %1419 = vmatmul.mubr.msk.f32.gmra.mxu0 %vm298_vm1, %v531_v29  ;;  %v1201_v29 = vld [vmem:[%s2083_s6] ss:$0 sm:$0xff]  ;;  %s1522_s6 = smov [#allocation2]  }
 0x1a1   :  { %v532_v36 = vmul.f32 %v516_v32, %v500_v34  ;;  %v503_v38 = vmax.f32 %v1394_v35, 0.0 }
 0x1a2   :  { %v463_v39 = vpop.f32.mrf.mxu1 }
 0x1a3   :  { %v502_v42 = vmax.f32 %v463_v39, 0.0  ;;  %1421 = vmatprep.mubr.msk.f32.mxu0 %vm298_vm1, %v532_v36  ;;  %v535_v45 = vmul.f32 %v519_v41, %v503_v38 }
 0x1a4   :  { %v1397_v43 = vpop.f32.mrf.mxu1  ;;  %1422 = vmatmul.mubr.msk.f32.gmra.mxu0 %vm298_vm1, %v533_v37 }
 0x1a5   :  { %v534_v44 = vmul.f32 %v518_v40, %v502_v42  ;;  %v505_v46 = vmax.f32 %v1397_v43, 0.0 }
 0x1a6   :  { %v473_v47 = vpop.f32.mrf.mxu1 }
 0x1a7   :  { %v504_v50 = vmax.f32 %v473_v47, 0.0  ;;  %1424 = vmatprep.mubr.msk.f32.mxu0 %vm298_vm1, %v534_v44  ;;  %v537_v53 = vmul.f32 %v521_v49, %v505_v46 }
 0x1a8   :  { %v1400_v51 = vpop.f32.mrf.mxu1  ;;  %1425 = vmatmul.mubr.msk.f32.gmra.mxu0 %vm298_vm1, %v535_v45 }
 0x1a9   :  { %v536_v52 = vmul.f32 %v520_v48, %v504_v50  ;;  %v507_v54 = vmax.f32 %v1400_v51, 0.0 }
 0x1aa   :  { %v483_v55 = vpop.f32.mrf.mxu1 }
 0x1ab   :  { %v506_v58 = vmax.f32 %v483_v55, 0.0  ;;  %1427 = vmatprep.mubr.msk.f32.mxu0 %vm298_vm1, %v536_v52  ;;  %v539_v61 = vmul.f32 %v523_v57, %v507_v54 }
 0x1ac   :  { %1428 = vmatmul.mubr.msk.f32.gmra.mxu0 %vm298_vm1, %v537_v53  ;;  %v1443_v59 = vpop.f32.mrf.mxu1 }
 0x1ad   :  { %v538_v60 = vmul.f32 %v522_v56, %v506_v58  ;;  %1118 = vst.msk [vmem:[%s2087_s10 + $0x8] sm:$0xff] %vm298_vm1, %v1443_v59 }
 0x1ae   :  { %v958_v62 = vpop.f32.mrf.mxu1 }
 0x1af   :  { %1430 = vmatprep.mubr.msk.f32.mxu0 %vm298_vm1, %v538_v60  ;;  %1117 = vst.msk [vmem:[%s2087_s10] sm:$0xff] %vm298_vm1, %v958_v62 }
 0x1b0   :  { %1431 = vmatmul.mubr.msk.f32.gmra.mxu0 %vm298_vm1, %v539_v61  ;;  %v1446_v63 = vpop.f32.mrf.mxu1 }
 0x1b1   :  { %1120 = vst.msk [vmem:[%s2087_s10 + $0x18] sm:$0xff] %vm298_vm1, %v1446_v63 }
 0x1b2   :  { %v968_v0 = vpop.f32.mrf.mxu1 }
 0x1b3   :  { %1119 = vst.msk [vmem:[%s2087_s10 + $0x10] sm:$0xff] %vm298_vm1, %v968_v0 }
 0x1b4   :  { %v1449_v1 = vpop.f32.mrf.mxu1 }
 0x1b5   :  { %1122 = vst.msk [vmem:[%s2087_s10 + $0x28] sm:$0xff] %vm298_vm1, %v1449_v1 }
 0x1b6   :  { %v978_v2 = vpop.f32.mrf.mxu1 }
 0x1b7   :  { %1121 = vst.msk [vmem:[%s2087_s10 + $0x20] sm:$0xff] %vm298_vm1, %v978_v2 }
 0x1b8   :  { %v1452_v3 = vpop.f32.mrf.mxu1 }
 0x1b9   :  { %1124 = vst.msk [vmem:[%s2087_s10 + $0x38] sm:$0xff] %vm298_vm1, %v1452_v3 }
 0x1ba   :  { %v988_v4 = vpop.f32.mrf.mxu1 }
 0x1bb   :  { %1123 = vst.msk [vmem:[%s2087_s10 + $0x30] sm:$0xff] %vm298_vm1, %v988_v4 }
 0x1bc   :  { %v1455_v5 = vpop.f32.mrf.mxu1 }
 0x1bd   :  { %1126 = vst.msk [vmem:[%s2087_s10 + $0x48] sm:$0xff] %vm298_vm1, %v1455_v5 }
 0x1be   :  { %v998_v6 = vpop.f32.mrf.mxu1 }
 0x1bf   :  { %1125 = vst.msk [vmem:[%s2087_s10 + $0x40] sm:$0xff] %vm298_vm1, %v998_v6 }
 0x1c0   :  { %v1458_v7 = vpop.f32.mrf.mxu1 }
 0x1c1   :  { %1128 = vst.msk [vmem:[%s2087_s10 + $0x58] sm:$0xff] %vm298_vm1, %v1458_v7 }
 0x1c2   :  { %v1008_v8 = vpop.f32.mrf.mxu1 }
 0x1c3   :  { %1127 = vst.msk [vmem:[%s2087_s10 + $0x50] sm:$0xff] %vm298_vm1, %v1008_v8 }
 0x1c4   :  { %v1461_v9 = vpop.f32.mrf.mxu1 }
 0x1c5   :  { %1130 = vst.msk [vmem:[%s2087_s10 + $0x68] sm:$0xff] %vm298_vm1, %v1461_v9 }
 0x1c6   :  { %v1018_v10 = vpop.f32.mrf.mxu1 }
 0x1c7   :  { %1129 = vst.msk [vmem:[%s2087_s10 + $0x60] sm:$0xff] %vm298_vm1, %v1018_v10 }
 0x1c8   :  { %v1464_v11 = vpop.f32.mrf.mxu1 }
 0x1c9   :  { %1132 = vst.msk [vmem:[%s2087_s10 + $0x78] sm:$0xff] %vm298_vm1, %v1464_v11 }
 0x1ca   :  { %v1028_v12 = vpop.f32.mrf.mxu1 }
 0x1cb   :  { %1131 = vst.msk [vmem:[%s2087_s10 + $0x70] sm:$0xff] %vm298_vm1, %v1028_v12 }
 0x1cc   :  { %v1467_v13 = vpop.f32.mrf.mxu1 }
 0x1cd   :  { %1134 = vst.msk [vmem:[%s2087_s10 + $0x88] sm:$0xff] %vm298_vm1, %v1467_v13 }
 0x1ce   :  { %v1038_v14 = vpop.f32.mrf.mxu1 }
 0x1cf   :  { %1133 = vst.msk [vmem:[%s2087_s10 + $0x80] sm:$0xff] %vm298_vm1, %v1038_v14 }
 0x1d0   :  { %v1470_v15 = vpop.f32.mrf.mxu1 }
 0x1d1   :  { %1136 = vst.msk [vmem:[%s2087_s10 + $0x98] sm:$0xff] %vm298_vm1, %v1470_v15 }
 0x1d2   :  { %v1048_v16 = vpop.f32.mrf.mxu1 }
 0x1d3   :  { %1135 = vst.msk [vmem:[%s2087_s10 + $0x90] sm:$0xff] %vm298_vm1, %v1048_v16 }
 0x1d4   :  { %v1473_v17 = vpop.f32.mrf.mxu1 }
 0x1d5   :  { %1138 = vst.msk [vmem:[%s2087_s10 + $0xa8] sm:$0xff] %vm298_vm1, %v1473_v17 }
 0x1d6   :  { %v1058_v18 = vpop.f32.mrf.mxu1 }
 0x1d7   :  { %1137 = vst.msk [vmem:[%s2087_s10 + $0xa0] sm:$0xff] %vm298_vm1, %v1058_v18 }
 0x1d8   :  { %v1476_v19 = vpop.f32.mrf.mxu1 }
 0x1d9   :  { %1140 = vst.msk [vmem:[%s2087_s10 + $0xb8] sm:$0xff] %vm298_vm1, %v1476_v19 }
 0x1da   :  { %v1068_v20 = vpop.f32.mrf.mxu1 }
 0x1db   :  { %1139 = vst.msk [vmem:[%s2087_s10 + $0xb0] sm:$0xff] %vm298_vm1, %v1068_v20 }
 0x1dc   :  { %v1479_v21 = vpop.f32.mrf.mxu1 }
 0x1dd   :  { %1142 = vst.msk [vmem:[%s2087_s10 + $0xc8] sm:$0xff] %vm298_vm1, %v1479_v21 }
 0x1de   :  { %v1078_v22 = vpop.f32.mrf.mxu1 }
 0x1df   :  { %1141 = vst.msk [vmem:[%s2087_s10 + $0xc0] sm:$0xff] %vm298_vm1, %v1078_v22 }
 0x1e0   :  { %v1482_v23 = vpop.f32.mrf.mxu1 }
 0x1e1   :  { %1144 = vst.msk [vmem:[%s2087_s10 + $0xd8] sm:$0xff] %vm298_vm1, %v1482_v23 }
 0x1e2   :  { %v1088_v24 = vpop.f32.mrf.mxu1 }
 0x1e3   :  { %1143 = vst.msk [vmem:[%s2087_s10 + $0xd0] sm:$0xff] %vm298_vm1, %v1088_v24 }
 0x1e4   :  { %v1485_v25 = vpop.f32.mrf.mxu1 }
 0x1e5   :  { %1146 = vst.msk [vmem:[%s2087_s10 + $0xe8] sm:$0xff] %vm298_vm1, %v1485_v25 }
 0x1e6   :  { %v1098_v26 = vpop.f32.mrf.mxu1 }
 0x1e7   :  { %1145 = vst.msk [vmem:[%s2087_s10 + $0xe0] sm:$0xff] %vm298_vm1, %v1098_v26 }
 0x1e8   :  { %v1488_v27 = vpop.f32.mrf.mxu1 }
 0x1e9   :  { %1148 = vst.msk [vmem:[%s2087_s10 + $0xf8] sm:$0xff] %vm298_vm1, %v1488_v27 }
 0x1ea   :  { %v1108_v28 = vpop.f32.mrf.mxu1 }
 0x1eb   :  { %1147 = vst.msk [vmem:[%s2087_s10 + $0xf0] sm:$0xff] %vm298_vm1, %v1108_v28  ;;  %s1154_s10 = sshll.u32 %s1522_s6, 4  ;;  %s1155_s10 = int_to_ptr.vmem [resolvable:$true] %s1154_s10 }
 0x1ec   :  { %s1500_s13 = scalar_lea.vmem %s1155_s10, 2048  ;;  %p1505_p1 = scmp.lt.s32.totalorder %s1155_s10, %s1155_s10 }
 0x1ed   :  { %p1501_p0 = scmp.ne.s32.totalorder %s1155_s10, %s1500_s13  ;;  %p1506_p2 = scmp.lt.s32.totalorder %s1500_s13, %s1500_s13 }
 0x1ef   :  { %p1507_p3 = por %p1506_p2, %p1505_p1 }
 0x1f1   :  { %p1508_p4 = pnand %p1507_p3, %p1501_p0 }
 0x254   :  { %v1411_v30 = vpop.f32.mrf.mxu0 }
 0x255   :  { %v671_v31 = vadd.f32 %v1411_v30, %v1201_v29 }
 0x256   :  { %v665_v32 = vpop.f32.mrf.mxu0 }
 0x257   :  { %745 = vst [vmem:[#allocation2 + $0x8] sm:$0xff] %v671_v31  ;;  %v666_v33 = vadd.f32 %v1201_v29, %v665_v32 }
 0x258   :  { %v1414_v34 = vpop.f32.mrf.mxu0 }
 0x259   :  { %744 = vst [vmem:[#allocation2] sm:$0xff] %v666_v33  ;;  %v681_v35 = vadd.f32 %v1414_v34, %v1201_v29 }
 0x25a   :  { %v675_v36 = vpop.f32.mrf.mxu0 }
 0x25b   :  { %747 = vst [vmem:[#allocation2 + $0x18] sm:$0xff] %v681_v35  ;;  %v676_v37 = vadd.f32 %v1201_v29, %v675_v36 }
 0x25c   :  { %v1417_v38 = vpop.f32.mrf.mxu0 }
 0x25d   :  { %746 = vst [vmem:[#allocation2 + $0x10] sm:$0xff] %v676_v37  ;;  %v691_v39 = vadd.f32 %v1417_v38, %v1201_v29 }
 0x25e   :  { %v685_v40 = vpop.f32.mrf.mxu0 }
 0x25f   :  { %749 = vst [vmem:[#allocation2 + $0x28] sm:$0xff] %v691_v39  ;;  %v686_v41 = vadd.f32 %v1201_v29, %v685_v40 }
 0x260   :  { %v1420_v42 = vpop.f32.mrf.mxu0 }
 0x261   :  { %748 = vst [vmem:[#allocation2 + $0x20] sm:$0xff] %v686_v41  ;;  %v701_v43 = vadd.f32 %v1420_v42, %v1201_v29 }
 0x262   :  { %v695_v44 = vpop.f32.mrf.mxu0 }
 0x263   :  { %751 = vst [vmem:[#allocation2 + $0x38] sm:$0xff] %v701_v43  ;;  %v696_v45 = vadd.f32 %v1201_v29, %v695_v44 }
 0x264   :  { %v1423_v46 = vpop.f32.mrf.mxu0 }
 0x265   :  { %750 = vst [vmem:[#allocation2 + $0x30] sm:$0xff] %v696_v45  ;;  %v711_v47 = vadd.f32 %v1423_v46, %v1201_v29 }
 0x266   :  { %v705_v48 = vpop.f32.mrf.mxu0 }
 0x267   :  { %753 = vst [vmem:[#allocation2 + $0x48] sm:$0xff] %v711_v47  ;;  %v706_v49 = vadd.f32 %v1201_v29, %v705_v48 }
 0x268   :  { %v1426_v50 = vpop.f32.mrf.mxu0 }
 0x269   :  { %752 = vst [vmem:[#allocation2 + $0x40] sm:$0xff] %v706_v49  ;;  %v721_v51 = vadd.f32 %v1426_v50, %v1201_v29 }
 0x26a   :  { %v715_v52 = vpop.f32.mrf.mxu0 }
 0x26b   :  { %755 = vst [vmem:[#allocation2 + $0x58] sm:$0xff] %v721_v51  ;;  %v716_v53 = vadd.f32 %v1201_v29, %v715_v52 }
 0x26c   :  { %v1429_v54 = vpop.f32.mrf.mxu0 }
 0x26d   :  { %754 = vst [vmem:[#allocation2 + $0x50] sm:$0xff] %v716_v53  ;;  %v731_v55 = vadd.f32 %v1429_v54, %v1201_v29 }
 0x26e   :  { %v725_v56 = vpop.f32.mrf.mxu0 }
 0x26f   :  { %757 = vst [vmem:[#allocation2 + $0x68] sm:$0xff] %v731_v55  ;;  %v726_v57 = vadd.f32 %v1201_v29, %v725_v56 }
 0x270   :  { %v1432_v58 = vpop.f32.mrf.mxu0 }
 0x271   :  { %756 = vst [vmem:[#allocation2 + $0x60] sm:$0xff] %v726_v57  ;;  %v741_v59 = vadd.f32 %v1432_v58, %v1201_v29 }
 0x272   :  { %v735_v60 = vpop.f32.mrf.mxu0 }
 0x273   :  { %759 = vst [vmem:[#allocation2 + $0x78] sm:$0xff] %v741_v59  ;;  %v736_v61 = vadd.f32 %v1201_v29, %v735_v60 }
 0x275   :  { %758 = vst [vmem:[#allocation2 + $0x70] sm:$0xff] %v736_v61 }
 0x276   :  { %1511 = shalt.err (!%p1508_p4)
}
 0x277   :  { %s1523_s1 = smov 128   ;;  %s1524_s14 = smov 8  }
 0x278   :  { %1160 = dma.vmem_to_hbm [thread:$0]  %s1155_s10, 2048, %s2086_s9, [#allocation3], %s1523_s1, %s1523_s1, %s1524_s14  }
 0x279   :  { %1520 = dma.done.wait [#allocation3], 2048  }
 0x27a   :  { %1521 = vsyncadd [#allocation3], 4294965248 }
 0x27b   :  { %1168 = vsyncpa [#allocation3], 1 }

</bundles_post_ra>
